<compile_context>
chip_gen: v7x
topology: tpu7x:2x2x1
jax: 0.10.0
libtpu: 0.0.40
codegen_flags: <defaults>
</compile_context>

<pallas_src>
import jax
import jax.numpy as jnp
from jax.experimental import pallas as pl
from jax.experimental.pallas import tpu as pltpu


NEG_SLOPE = 0.01   # torch.nn.LeakyReLU default
_PAD = 128         # lane width used to pad the 10-wide tail layer
_MXU = 256         # batch-tile alignment (v6e/v7x MXU; also multiple of 128 for v5e)
_BT_CAP = 1024     # >1024 rows adds VMEM pressure without more HBM-roofline gain


def _leaky_relu(x):
    return jnp.where(x > 0, x, NEG_SLOPE * x)


def _round_up(n, m):
    return ((n + m - 1) // m) * m


# ----------------------------- tile selection ------------------------------ #

def _vmem_capacity_bytes():
    try:
        return int(pltpu.get_tpu_info().vmem_capacity_bytes)
    except Exception:
        return 64 * 1024 * 1024   # conservative default (v7x per-core VMEM)


def _vmem_budget():
    # feedback: 0.6 of capacity (512-1024 row tiles already hit ~85% of HBM roofline)
    return int(0.6 * _vmem_capacity_bytes())


def _fixed_bytes(k_block, h1, hdim, w_isz):
    # weights + biases resident in VMEM (worst case: 2 pipeline buffers each)
    w = (k_block * h1 + h1 * hdim + hdim * _PAD) * w_isz + _PAD * 4
    b = (h1 + hdim + _PAD + 1) * 4
    return 2 * (w + b)


def _per_row_bytes(k_block, h1, hdim, x_isz):
    # 2 x buffers + f32 layer-1 accumulator + f32 intermediates + (bt,1) output
    return 2 * k_block * x_isz + (2 * h1 + hdim + _PAD + 2) * 4


def _max_rows(k_block, h1, hdim, x_isz, w_isz):
    avail = _vmem_budget() - _fixed_bytes(k_block, h1, hdim, w_isz)
    return 0 if avail <= 0 else avail // _per_row_bytes(k_block, h1, hdim, x_isz)


def _choose_k_tile(indim, h1, hdim, x_isz, w_isz):
    """Keep all of w1 resident when an MXU-aligned batch tile still fits;
    otherwise tile the indim (K) axis so bt can stay >= _MXU (v7x, 64 MiB)."""
    if indim <= 512 or _max_rows(indim, h1, hdim, x_isz, w_isz) >= _MXU:
        return indim
    for cand in (8192, 4096, 2048, 1024, 512):          # multiples of 128
        if cand < indim and _max_rows(cand, h1, hdim, x_isz, w_isz) >= _MXU:
            return cand
    return 512


def _choose_batch_tile(B, tk, h1, hdim, x_isz, w_isz):
    rows = max(8, _max_rows(tk, h1, hdim, x_isz, w_isz))
    if B < 2 * _MXU and B <= rows:
        return _round_up(B, 8)            # tiny batch: single tile, no grid overhead
    bt = min(rows, _BT_CAP, _round_up(B, _MXU))
    bt = (bt // _MXU) * _MXU if bt >= _MXU else _round_up(bt, 8)
    bt = max(bt, 8)
    # soft preference: an even number of batch steps balances the v7x megacore
    steps = pl.cdiv(B, bt)
    if steps >= 3 and steps % 2 == 1:
        alt = _round_up(pl.cdiv(B, steps + 1), _MXU if bt >= _MXU else 8)
        if 0 < alt <= bt and pl.cdiv(B, alt) % 2 == 0:
            bt = alt
    return bt


# ------------------------------ parameter prep ----------------------------- #

def prepare_d_params(params, compute_dtype=jnp.bfloat16, k_tile=None):
    """One-time prep (hoisted out of the hot path): cast weights to the MXU
    operand dtype (bf16 by default), keep biases f32, lane-pad the narrow tail
    layers to 128, store layer 4 as a (1,128) f32 row (VPU path), zero K-pad w1
    when layer 1 is K-tiled. Weights are stored (in_features, out_features)."""
    cdt = jnp.dtype(compute_dtype)
    indim, h1 = params["w1"].shape
    hdim = params["w2"].shape[1]
    n3 = params["w3"].shape[1]                       # 10

    if k_tile is not None:
        tk = max(128, (int(k_tile) // 128) * 128)
        if tk >= indim:
            tk = indim
    else:
        tk = _choose_k_tile(indim, h1, hdim, cdt.itemsize, cdt.itemsize)

    w1 = params["w1"].astype(cdt)
    if indim % tk != 0:
        kpad = _round_up(indim, tk)                  # zero rows: OOB x cols hit zeros
        w1 = jnp.zeros((kpad, h1), cdt).at[:indim, :].set(w1)
    b1 = params["b1"].astype(jnp.float32).reshape(1, -1)
    w2 = params["w2"].astype(cdt)
    b2 = params["b2"].astype(jnp.float32).reshape(1, -1)
    w3 = jnp.zeros((hdim, _PAD), cdt).at[:, :n3].set(params["w3"].astype(cdt))
    b3 = jnp.zeros((1, _PAD), jnp.float32).at[:, :n3].set(
        params["b3"].astype(jnp.float32).reshape(1, -1))
    # layer 4 is done on the VPU/XLU: z = sum(h3 * w4_row, -1) + b4 (pad lanes = 0)
    w4 = jnp.zeros((1, _PAD), jnp.float32).at[:, :n3].set(
        params["w4"].astype(jnp.float32).reshape(1, -1))
    b4 = params["b4"].astype(jnp.float32).reshape(1, 1)

    return {"w1": w1, "b1": b1, "w2": w2, "b2": b2, "w3": w3, "b3": b3,
            "w4": w4, "b4": b4, "tk": int(tk), "indim": int(indim)}


# --------------------------------- kernel ---------------------------------- #

def _make_d_kernel(indim, tk):
    needs_k_mask = (indim % tk) != 0

    def d_kernel(x_ref, w1_ref, b1_ref, w2_ref, b2_ref, w3_ref, b3_ref,
                 w4_ref, b4_ref, o_ref, h1_acc):
        k = pl.program_id(1)

        @pl.when(k == 0)
        def _():
            h1_acc[...] = jnp.zeros_like(h1_acc)

        x = x_ref[...]
        if needs_k_mask:
            # Guard the ragged last K block: w1's K-pad rows are exact zeros,
            # but garbage x columns could be NaN/Inf, so zero them explicitly.
            col = jax.lax.broadcasted_iota(jnp.int32, x.shape, dimension=1)
            x = jnp.where(col + k * tk < indim, x, jnp.zeros_like(x))

        # layer 1 partial-K accumulation (f32 accumulator in VMEM)
        h1_acc[...] += jnp.dot(x, w1_ref[...], preferred_element_type=jnp.float32)

        @pl.when(k == pl.num_programs(1) - 1)
        def _():
            cdt = w2_ref.dtype                        # MXU operand dtype
            # elementwise math stays f32 (v5e has no bf16 VPU/EUP)
            h = _leaky_relu(h1_acc[...] + b1_ref[...])
            h = _leaky_relu(jnp.dot(h.astype(cdt), w2_ref[...],
                                    preferred_element_type=jnp.float32) + b2_ref[...])
            h = _leaky_relu(jnp.dot(h.astype(cdt), w3_ref[...],
                                    preferred_element_type=jnp.float32) + b3_ref[...])
            # layer 4 (10 -> 1): VPU multiply + XLU lane-reduce; padded lanes are 0
            z = jnp.sum(h * w4_ref[...], axis=-1, keepdims=True) + b4_ref[...]
            o_ref[...] = jax.nn.sigmoid(z).astype(o_ref.dtype)

    return d_kernel


# --------------------------------- wrapper --------------------------------- #

def d_forward(x, prep, *, batch_tile=None):
    """Forward pass of D using prepared params from prepare_d_params().
    Returns (B, 1) f32 probabilities. bf16 MXU-operand path (the default prep)
    downcasts the x stream and inter-layer dot operands; accumulation is f32."""
    B, indim = x.shape
    assert indim == prep["indim"], "x feature dim does not match prepared params"
    h1 = prep["b1"].shape[1]
    hdim = prep["w2"].shape[1]
    tk = int(prep["tk"])
    cdt = prep["w1"].dtype

    # bf16 x stream halves the dominant HBM traffic (ideally the caller already
    # supplies bf16 / the cast fuses with the producer).
    x = x.astype(cdt)
    x_isz = jnp.dtype(cdt).itemsize
    w_isz = x_isz

    if batch_tile is None:
        bt = _choose_batch_tile(B, tk, h1, hdim, x_isz, w_isz)
    else:
        bt = max(8, _round_up(int(batch_tile), 8))

    nb = pl.cdiv(B, bt)
    nk = pl.cdiv(indim, tk)
    kernel = _make_d_kernel(indim, tk)

    w_bytes = (indim * h1 + h1 * hdim + hdim * _PAD) * w_isz + _PAD * 4
    b_bytes = (h1 + hdim + _PAD + 1) * 4
    cost = pl.CostEstimate(
        flops=int(2 * B * (indim * h1 + h1 * hdim + hdim * _PAD) + 3 * B * _PAD),
        transcendentals=int(B),
        bytes_accessed=int(B * indim * x_isz + B * 4 + w_bytes + b_bytes),
    )
    vmem_cap = _vmem_capacity_bytes()
    vmem_limit = int(min(0.85 * vmem_cap, 100 * 1024 * 1024))

    args = (x, prep["w1"], prep["b1"], prep["w2"], prep["b2"],
            prep["w3"], prep["b3"], prep["w4"], prep["b4"])

    def call(single_buffer_consts):
        def const_spec(shape):
            imap = lambda i, k: (0, 0)
            if single_buffer_consts:
                # constant blocks: one buffer is enough (saves VMEM for bigger bt)
                return pl.BlockSpec(shape, imap, pipeline_mode=pl.Buffered(1))
            return pl.BlockSpec(shape, imap)

        in_specs = [
            pl.BlockSpec((bt, tk), lambda i, k: (i, k)),     # x      (streamed)
            pl.BlockSpec((tk, h1), lambda i, k: (k, 0)),     # w1     (streamed over K)
            const_spec((1, h1)),                             # b1
            const_spec((h1, hdim)),                          # w2
            const_spec((1, hdim)),                           # b2
            const_spec((hdim, _PAD)),                        # w3 (lane-padded)
            const_spec((1, _PAD)),                           # b3
            const_spec((1, _PAD)),                           # w4 row (lane-padded)
            const_spec((1, 1)),                              # b4
        ]
        return pl.pallas_call(
            kernel,
            out_shape=jax.ShapeDtypeStruct((B, 1), jnp.float32),
            grid_spec=pltpu.PrefetchScalarGridSpec(
                num_scalar_prefetch=0,
                grid=(nb, nk),
                in_specs=in_specs,
                out_specs=pl.BlockSpec((bt, 1), lambda i, k: (i, 0)),
                scratch_shapes=[pltpu.VMEM((bt, h1), jnp.float32)],
            ),
            compiler_params=pltpu.CompilerParams(
                dimension_semantics=("parallel", "arbitrary"),
                vmem_limit_bytes=vmem_limit),
            cost_estimate=cost,
        )(*args)

    try:
        return call(True)
    except (TypeError, ValueError, pltpu.LoweringException):
        # narrow fallback: only when pipeline_mode=pl.Buffered(1) is rejected;
        # genuine resource / compile errors still propagate.
        return call(False)


# ---------------------------- init & reference ----------------------------- #

def init_d_params(key, indim, hdim=128):
    """Mimics torch kaiming_uniform_ on weights (bound = sqrt(6/fan_in)) and the
    default Linear bias init (uniform(-1/sqrt(fan_in), 1/sqrt(fan_in)))."""
    dims = [(indim, 2 * hdim), (2 * hdim, hdim), (hdim, 10), (10, 1)]
    params = {}
    for li, (fan_in, fan_out) in enumerate(dims, start=1):
        key, kw, kb = jax.random.split(key, 3)
        w_bound = float(jnp.sqrt(6.0 / fan_in))
        b_bound = float(1.0 / jnp.sqrt(fan_in))
        # stored transposed relative to torch: (in_features, out_features)
        params[f"w{li}"] = jax.random.uniform(
            kw, (fan_in, fan_out), jnp.float32, -w_bound, w_bound)
        params[f"b{li}"] = jax.random.uniform(
            kb, (1, fan_out), jnp.float32, -b_bound, b_bound)
    return params


def d_reference(x, params):
    """Plain-JAX reference for correctness checks."""
    h = x @ params["w1"] + params["b1"]
    h = jnp.where(h > 0, h, NEG_SLOPE * h)
    h = h @ params["w2"] + params["b2"]
    h = jnp.where(h > 0, h, NEG_SLOPE * h)
    h = h @ params["w3"] + params["b3"]
    h = jnp.where(h > 0, h, NEG_SLOPE * h)
    z = h @ params["w4"] + params["b4"]
    return jax.nn.sigmoid(z)


if __name__ == "__main__":
    key = jax.random.PRNGKey(0)
    k_p1, k_x1, k_p2, k_x2, k_p4, k_x4 = jax.random.split(key, 6)

    # Test 1: small shapes, f32 MXU operands, single tile, tight tolerance.
    batch, indim, hdim = 8, 32, 32
    params = init_d_params(k_p1, indim, hdim)
    prep_f32 = prepare_d_params(params, compute_dtype=jnp.float32)
    x = jax.random.normal(k_x1, (batch, indim), jnp.float32)
    out = jax.block_until_ready(d_forward(x, prep_f32))
    ref = d_reference(x, params)
    assert out.shape == (batch, 1)
    assert jnp.allclose(out, ref, atol=1e-5, rtol=1e-5), "mismatch (test 1)"

    # Test 2: ragged batch + multi-step grid, default bf16 operands (loose tol).
    batch2, indim2, hdim2 = 200, 96, 32
    params2 = init_d_params(k_p2, indim2, hdim2)
    prep_bf16 = prepare_d_params(params2)                  # bf16 is the default
    x2 = jax.random.normal(k_x2, (batch2, indim2), jnp.float32)
    out2 = jax.block_until_ready(d_forward(x2, prep_bf16, batch_tile=64))
    ref2 = d_reference(x2, params2)
    assert out2.shape == (batch2, 1)
    assert jnp.allclose(out2, ref2, atol=6e-2), "mismatch (test 2, bf16)"

    # Test 3: same ragged batch, f32 operands, tight tolerance (boundary check).
    prep2_f32 = prepare_d_params(params2, compute_dtype=jnp.float32)
    out3 = jax.block_until_ready(d_forward(x2, prep2_f32, batch_tile=64))
    assert jnp.allclose(out3, ref2, atol=1e-4, rtol=1e-4), "mismatch (test 3)"

    # Test 4: forced K-tiling (ragged indim) exercises the layer-1 accumulator
    # path with the in-kernel column mask and K-padded w1.
    batch4, indim4, hdim4 = 96, 300, 32
    params4 = init_d_params(k_p4, indim4, hdim4)
    prep4 = prepare_d_params(params4, compute_dtype=jnp.float32, k_tile=128)
    x4 = jax.random.normal(k_x4, (batch4, indim4), jnp.float32)
    out4 = jax.block_until_ready(d_forward(x4, prep4, batch_tile=64))
    ref4 = d_reference(x4, params4)
    assert out4.shape == (batch4, 1)
    assert jnp.allclose(out4, ref4, atol=5e-4, rtol=5e-4), "mismatch (test 4)"

    print("KERNEL_OK")
</pallas_src>

<mosaic_0001>
module attributes {stable_mosaic.version = 11 : i64} {
  func.func @d_kernel(%arg0: i32, %arg1: i32, %arg2: memref<8x32xf32, #tpu.memory_space<vmem>>, %arg3: memref<32x64xf32, #tpu.memory_space<vmem>>, %arg4: memref<1x64xf32, #tpu.memory_space<vmem>>, %arg5: memref<64x32xf32, #tpu.memory_space<vmem>>, %arg6: memref<1x32xf32, #tpu.memory_space<vmem>>, %arg7: memref<32x128xf32, #tpu.memory_space<vmem>>, %arg8: memref<1x128xf32, #tpu.memory_space<vmem>>, %arg9: memref<1x128xf32, #tpu.memory_space<vmem>>, %arg10: memref<1x1xf32, #tpu.memory_space<vmem>>, %arg11: memref<8x1xf32, #tpu.memory_space<vmem>>, %arg12: memref<8x64xf32, #tpu.memory_space<vmem>>) attributes {dimension_semantics = [#tpu.dimension_semantics<parallel>, #tpu.dimension_semantics<arbitrary>], iteration_bounds = array<i64: 1, 1>, scalar_prefetch = 0 : i64, scratch_operands = 1 : i64, tpu.core_type = #tpu.core_type<tc>, window_params = [{transform_indices = @transform_0, window_bounds = array<i64: 8, 32>}, {transform_indices = @transform_1, window_bounds = array<i64: 32, 64>}, {pipeline_mode = #tpu.pipeline_mode<synchronous>, transform_indices = @transform_2, window_bounds = array<i64: 1, 64>}, {pipeline_mode = #tpu.pipeline_mode<synchronous>, transform_indices = @transform_3, window_bounds = array<i64: 64, 32>}, {pipeline_mode = #tpu.pipeline_mode<synchronous>, transform_indices = @transform_4, window_bounds = array<i64: 1, 32>}, {pipeline_mode = #tpu.pipeline_mode<synchronous>, transform_indices = @transform_5, window_bounds = array<i64: 32, 128>}, {pipeline_mode = #tpu.pipeline_mode<synchronous>, transform_indices = @transform_6, window_bounds = array<i64: 1, 128>}, {pipeline_mode = #tpu.pipeline_mode<synchronous>, transform_indices = @transform_7, window_bounds = array<i64: 1, 128>}, {pipeline_mode = #tpu.pipeline_mode<synchronous>, transform_indices = @transform_8, window_bounds = array<i64: 1, 1>}, {transform_indices = @transform_9, window_bounds = array<i64: 8, 1>}]} {
    %c0_i32 = arith.constant 0 : i32
    %0 = arith.cmpi eq, %arg1, %c0_i32 : i32
    %1 = arith.extui %0 : i1 to i32
    %c0_i32_0 = arith.constant 0 : i32
    %2 = arith.cmpi ne, %1, %c0_i32_0 : i32
    scf.if %2 {
      %cst_10 = arith.constant 0.000000e+00 : f32
      %12 = vector.broadcast %cst_10 : f32 to vector<8x64xf32>
      %c0_11 = arith.constant 0 : index
      %c0_12 = arith.constant 0 : index
      %13 = vector.load %arg12[%c0_11, %c0_12] : memref<8x64xf32, #tpu.memory_space<vmem>>, vector<8x64xf32>
      tpu.vector_store %arg12[%c0_11, %c0_12], %12 {strides = array<i32>} : memref<8x64xf32, #tpu.memory_space<vmem>>, vector<8x64xf32>,
    } else {
    }
    %c0 = arith.constant 0 : index
    %c0_1 = arith.constant 0 : index
    %3 = vector.load %arg2[%c0, %c0_1] : memref<8x32xf32, #tpu.memory_space<vmem>>, vector<8x32xf32>
    %c0_2 = arith.constant 0 : index
    %c0_3 = arith.constant 0 : index
    %4 = vector.load %arg12[%c0_2, %c0_3] : memref<8x64xf32, #tpu.memory_space<vmem>>, vector<8x64xf32>
    %c0_4 = arith.constant 0 : index
    %c0_5 = arith.constant 0 : index
    %5 = vector.load %arg3[%c0_4, %c0_5] : memref<32x64xf32, #tpu.memory_space<vmem>>, vector<32x64xf32>
    %cst = arith.constant dense<0.000000e+00> : vector<8x64xf32>
    %6 = tpu.matmul %3, %5, %cst {dimension_numbers = #tpu.dot_dimension_numbers<[1], [0], [0], [1], [0, 0, 1, 1], [], []>} : vector<8x32xf32>, vector<32x64xf32>, vector<8x64xf32> -> vector<8x64xf32>
    %7 = arith.addf %4, %6 : vector<8x64xf32>
    %c0_6 = arith.constant 0 : index
    %c0_7 = arith.constant 0 : index
    %8 = vector.load %arg12[%c0_6, %c0_7] : memref<8x64xf32, #tpu.memory_space<vmem>>, vector<8x64xf32>
    tpu.vector_store %arg12[%c0_6, %c0_7], %7 {strides = array<i32>} : memref<8x64xf32, #tpu.memory_space<vmem>>, vector<8x64xf32>,
    %c0_i32_8 = arith.constant 0 : i32
    %9 = arith.cmpi eq, %arg1, %c0_i32_8 : i32
    %10 = arith.extui %9 : i1 to i32
    %c0_i32_9 = arith.constant 0 : i32
    %11 = arith.cmpi ne, %10, %c0_i32_9 : i32
    scf.if %11 {
      %c0_10 = arith.constant 0 : index
      %c0_11 = arith.constant 0 : index
      %12 = vector.load %arg12[%c0_10, %c0_11] : memref<8x64xf32, #tpu.memory_space<vmem>>, vector<8x64xf32>
      %c0_12 = arith.constant 0 : index
      %c0_13 = arith.constant 0 : index
      %13 = vector.load %arg4[%c0_12, %c0_13] : memref<1x64xf32, #tpu.memory_space<vmem>>, vector<1x64xf32>
      %14 = vector.broadcast %13 : vector<1x64xf32> to vector<8x64xf32>
      %15 = arith.addf %12, %14 : vector<8x64xf32>
      %cst_14 = arith.constant 0.000000e+00 : f32
      %16 = vector.broadcast %cst_14 : f32 to vector<8x64xf32>
      %17 = arith.cmpf ogt, %15, %16 : vector<8x64xf32>
      %cst_15 = arith.constant 0.00999999977 : f32
      %18 = vector.broadcast %cst_15 : f32 to vector<8x64xf32>
      %19 = arith.mulf %18, %15 : vector<8x64xf32>
      %20 = arith.select %17, %15, %19 : vector<8x64xi1>, vector<8x64xf32>
      %c0_16 = arith.constant 0 : index
      %c0_17 = arith.constant 0 : index
      %21 = vector.load %arg5[%c0_16, %c0_17] : memref<64x32xf32, #tpu.memory_space<vmem>>, vector<64x32xf32>
      %cst_18 = arith.constant dense<0.000000e+00> : vector<8x32xf32>
      %22 = tpu.matmul %20, %21, %cst_18 {dimension_numbers = #tpu.dot_dimension_numbers<[1], [0], [0], [1], [0, 0, 1, 1], [], []>} : vector<8x64xf32>, vector<64x32xf32>, vector<8x32xf32> -> vector<8x32xf32>
      %c0_19 = arith.constant 0 : index
      %c0_20 = arith.constant 0 : index
      %23 = vector.load %arg6[%c0_19, %c0_20] : memref<1x32xf32, #tpu.memory_space<vmem>>, vector<1x32xf32>
      %24 = vector.broadcast %23 : vector<1x32xf32> to vector<8x32xf32>
      %25 = arith.addf %22, %24 : vector<8x32xf32>
      %cst_21 = arith.constant 0.000000e+00 : f32
      %26 = vector.broadcast %cst_21 : f32 to vector<8x32xf32>
      %27 = arith.cmpf ogt, %25, %26 : vector<8x32xf32>
      %cst_22 = arith.constant 0.00999999977 : f32
      %28 = vector.broadcast %cst_22 : f32 to vector<8x32xf32>
      %29 = arith.mulf %28, %25 : vector<8x32xf32>
      %30 = arith.select %27, %25, %29 : vector<8x32xi1>, vector<8x32xf32>
      %c0_23 = arith.constant 0 : index
      %c0_24 = arith.constant 0 : index
      %31 = vector.load %arg7[%c0_23, %c0_24] : memref<32x128xf32, #tpu.memory_space<vmem>>, vector<32x128xf32>
      %cst_25 = arith.constant dense<0.000000e+00> : vector<8x128xf32>
      %32 = tpu.matmul %30, %31, %cst_25 {dimension_numbers = #tpu.dot_dimension_numbers<[1], [0], [0], [1], [0, 0, 1, 1], [], []>} : vector<8x32xf32>, vector<32x128xf32>, vector<8x128xf32> -> vector<8x128xf32>
      %c0_26 = arith.constant 0 : index
      %c0_27 = arith.constant 0 : index
      %33 = vector.load %arg8[%c0_26, %c0_27] : memref<1x128xf32, #tpu.memory_space<vmem>>, vector<1x128xf32>
      %34 = vector.broadcast %33 : vector<1x128xf32> to vector<8x128xf32>
      %35 = arith.addf %32, %34 : vector<8x128xf32>
      %cst_28 = arith.constant 0.000000e+00 : f32
      %36 = vector.broadcast %cst_28 : f32 to vector<8x128xf32>
      %37 = arith.cmpf ogt, %35, %36 : vector<8x128xf32>
      %cst_29 = arith.constant 0.00999999977 : f32
      %38 = vector.broadcast %cst_29 : f32 to vector<8x128xf32>
      %39 = arith.mulf %38, %35 : vector<8x128xf32>
      %40 = arith.select %37, %35, %39 : vector<8x128xi1>, vector<8x128xf32>
      %c0_30 = arith.constant 0 : index
      %c0_31 = arith.constant 0 : index
      %41 = vector.load %arg9[%c0_30, %c0_31] : memref<1x128xf32, #tpu.memory_space<vmem>>, vector<1x128xf32>
      %42 = vector.broadcast %41 : vector<1x128xf32> to vector<8x128xf32>
      %43 = arith.mulf %40, %42 : vector<8x128xf32>
      %cst_32 = arith.constant dense<0.000000e+00> : vector<8xf32>
      %44 = vector.multi_reduction <add>, %43, %cst_32 [1] : vector<8x128xf32> to vector<8xf32>
      %45 = vector.shape_cast %44 : vector<8xf32> to vector<8x1xf32>
      %c0_33 = arith.constant 0 : index
      %c0_34 = arith.constant 0 : index
      %46 = vector.load %arg10[%c0_33, %c0_34] : memref<1x1xf32, #tpu.memory_space<vmem>>, vector<1x1xf32>
      %47 = vector.broadcast %46 : vector<1x1xf32> to vector<8x1xf32>
      %48 = arith.addf %45, %47 : vector<8x1xf32>
      %49 = arith.negf %48 : vector<8x1xf32>
      %50 = math.exp %49 : vector<8x1xf32>
      %cst_35 = arith.constant 1.000000e+00 : f32
      %51 = vector.broadcast %cst_35 : f32 to vector<8x1xf32>
      %52 = arith.addf %51, %50 : vector<8x1xf32>
      %53 = arith.divf %51, %52 : vector<8x1xf32>
      %c0_36 = arith.constant 0 : index
      %c0_37 = arith.constant 0 : index
      %54 = vector.load %arg11[%c0_36, %c0_37] : memref<8x1xf32, #tpu.memory_space<vmem>>, vector<8x1xf32>
      tpu.vector_store %arg11[%c0_36, %c0_37], %53 {strides = array<i32>} : memref<8x1xf32, #tpu.memory_space<vmem>>, vector<8x1xf32>,
    } else {
    }
    return
  }
  func.func @transform_0(%arg0: i32, %arg1: i32) -> (i32, i32) {
    %c0_i32 = arith.constant 0 : i32
    return %arg0, %arg1 : i32, i32
  }
  func.func @transform_1(%arg0: i32, %arg1: i32) -> (i32, i32) {
    %c0_i32 = arith.constant 0 : i32
    %c0_i32_0 = arith.constant 0 : i32
    return %arg1, %c0_i32 : i32, i32
  }
  func.func @transform_2(%arg0: i32, %arg1: i32) -> (i32, i32) {
    %c0_i32 = arith.constant 0 : i32
    %c0_i32_0 = arith.constant 0 : i32
    %c0_i32_1 = arith.constant 0 : i32
    return %c0_i32, %c0_i32_0 : i32, i32
  }
  func.func @transform_3(%arg0: i32, %arg1: i32) -> (i32, i32) {
    %c0_i32 = arith.constant 0 : i32
    %c0_i32_0 = arith.constant 0 : i32
    %c0_i32_1 = arith.constant 0 : i32
    return %c0_i32, %c0_i32_0 : i32, i32
  }
  func.func @transform_4(%arg0: i32, %arg1: i32) -> (i32, i32) {
    %c0_i32 = arith.constant 0 : i32
    %c0_i32_0 = arith.constant 0 : i32
    %c0_i32_1 = arith.constant 0 : i32
    return %c0_i32, %c0_i32_0 : i32, i32
  }
  func.func @transform_5(%arg0: i32, %arg1: i32) -> (i32, i32) {
    %c0_i32 = arith.constant 0 : i32
    %c0_i32_0 = arith.constant 0 : i32
    %c0_i32_1 = arith.constant 0 : i32
    return %c0_i32, %c0_i32_0 : i32, i32
  }
  func.func @transform_6(%arg0: i32, %arg1: i32) -> (i32, i32) {
    %c0_i32 = arith.constant 0 : i32
    %c0_i32_0 = arith.constant 0 : i32
    %c0_i32_1 = arith.constant 0 : i32
    return %c0_i32, %c0_i32_0 : i32, i32
  }
  func.func @transform_7(%arg0: i32, %arg1: i32) -> (i32, i32) {
    %c0_i32 = arith.constant 0 : i32
    %c0_i32_0 = arith.constant 0 : i32
    %c0_i32_1 = arith.constant 0 : i32
    return %c0_i32, %c0_i32_0 : i32, i32
  }
  func.func @transform_8(%arg0: i32, %arg1: i32) -> (i32, i32) {
    %c0_i32 = arith.constant 0 : i32
    %c0_i32_0 = arith.constant 0 : i32
    %c0_i32_1 = arith.constant 0 : i32
    return %c0_i32, %c0_i32_0 : i32, i32
  }
  func.func @transform_9(%arg0: i32, %arg1: i32) -> (i32, i32) {
    %c0_i32 = arith.constant 0 : i32
    %c0_i32_0 = arith.constant 0 : i32
    return %arg0, %c0_i32 : i32, i32
  }
}

</mosaic_0001>

<bundles_post_ra>
// kernel: tpu_custom_call.1
= control target key start
LH: loop header
LB: loop body
LE: loop exit
PB: predicated region body
PF: predicated region fallthrough
CT: control target
= control target key end

     0   :  { %v446_v0 = vmov 0.0|0.0   ;;  %vm447_vm0 = vmmov 0   ;;  %v448_v4 = vmov 0.0   ;;  %vm38_vm1 = vcmask 523264   ;;  %s576_s1 = inlined_call_operand.vmem [shape: f32[32,64], index: 1, kind: input, shape index: {}]   ;;  %s577_s0 = inlined_call_operand.vmem [shape: f32[8,32], index: 0, kind: input, shape index: {}]   ;;  %s578_s3 = inlined_call_operand.vmem [shape: f32[64,32], index: 3, kind: input, shape index: {}]   ;;  %s579_s5 = inlined_call_operand.vmem [shape: f32[32,128], index: 5, kind: input, shape index: {}]   ;;  %s580_s2 = inlined_call_operand.vmem [shape: f32[1,64], index: 2, kind: input, shape index: {}]   ;;  %s581_s4 = inlined_call_operand.vmem [shape: f32[1,32], index: 4, kind: input, shape index: {}]   ;;  %s582_s8 = inlined_call_operand.<no memory space> [shape: f32[1,1], index: 8, kind: input, shape index: {}]   ;;  %s583_s6 = inlined_call_operand.vmem [shape: f32[1,128], index: 6, kind: input, shape index: {}]   ;;  %s584_s7 = inlined_call_operand.vmem [shape: f32[1,128], index: 7, kind: input, shape index: {}]   ;;  %s585_s9 = inlined_call_operand.vmem [shape: f32[8,1], index: 9, kind: output, shape index: {}]  }
   0x1   :  { %415 = vmatprep.subr.bf16.mxu0 %v446_v0  ;;  %v42_v1 = vld [vmem:[%s576_s1] sm:$0xff]  ;;  %v43_v2 = vld [vmem:[%s576_s1 + $0x8] sm:$0xff]  ;;  %v44_v3 = vld [vmem:[%s576_s1 + $0x10] sm:$0xff]  ;;  %382 = vmatprep.mubr.msk.f32.mxu0 %vm447_vm0, %v448_v4  ;;  %39 = vst.msk [vmem:[#allocation2] sm:$0xff] %vm38_vm1, %v448_v4  ;;  %vm46_vm2 = vcmask 261120   ;;  %v14_v42 = vstv %s582_s8  ;;  %vm340_vm6 = vcmask 7168  }
   0x2   :  { %v416_v5 = vpack.c.bf16 %v43_v2, %v42_v1  ;;  %v45_v6 = vld [vmem:[%s576_s1 + $0x18] sm:$0xff]  ;;  %421 = vmatprep.subr.bf16.mxu1 %v446_v0  ;;  %401 = vmatprep.mubr.msk.f32.mxu1 %vm447_vm0, %v448_v4  ;;  %v40_v8 = vld [vmem:[%s577_s0] sm:$0xff]  ;;  %v139_v10 = vld [vmem:[%s578_s3 + $0x8] sm:$0xff]  ;;  %15 = vst [vmem:[#allocation3] sm:$0x1] %v14_v42 }
   0x3   :  { %v419_v7 = vpack.c.bf16 %v45_v6, %v44_v3  ;;  %v138_v9 = vld [vmem:[%s578_s3] sm:$0xff]  ;;  %v140_v12 = vld [vmem:[%s578_s3 + $0x10] sm:$0xff]  ;;  %v141_v13 = vld [vmem:[%s578_s3 + $0x18] sm:$0xff] }
   0x4   :  { %417 = vmatpush3.bf16.msra.mxu0 %v416_v5  ;;  %v422_v11 = vpack.c.bf16 %v139_v10, %v138_v9  ;;  %v425_v14 = vpack.c.bf16 %v141_v13, %v140_v12  ;;  %v142_v15 = vld [vmem:[%s578_s3 + $0x20] sm:$0xff]  ;;  %v143_v16 = vld [vmem:[%s578_s3 + $0x28] sm:$0xff]  ;;  %v144_v18 = vld [vmem:[%s578_s3 + $0x30] sm:$0xff] }
   0x5   :  { %418 = vmatprep.subr.bf16.mxu0 %v446_v0  ;;  %v428_v17 = vpack.c.bf16 %v143_v16, %v142_v15  ;;  %v145_v19 = vld [vmem:[%s578_s3 + $0x38] sm:$0xff]  ;;  %v229_v21 = vld [vmem:[%s579_s5] sm:$0xff]  ;;  %v230_v22 = vld [vmem:[%s579_s5 + $0x8] sm:$0xff] }
   0x6   :  { %423 = vmatpush3.bf16.msra.mxu1 %v422_v11  ;;  %v431_v20 = vpack.c.bf16 %v145_v19, %v144_v18  ;;  %v434_v23 = vpack.c.bf16 %v230_v22, %v229_v21  ;;  %v347_v28 = vld [vmem:[%s580_s2] ss:$0 sm:$0xff]  ;;  %v231_v33 = vld [vmem:[%s579_s5 + $0x10] sm:$0xff]  ;;  %v232_v34 = vld [vmem:[%s579_s5 + $0x18] sm:$0xff] }
   0x7   :  { %424 = vmatprep.subr.bf16.mxu1 %v446_v0  ;;  %v437_v35 = vpack.c.bf16 %v232_v34, %v231_v33  ;;  %v348_v36 = vld [vmem:[%s581_s4] ss:$0 sm:$0xff] }
   0x8   :  { %420 = vmatpush3.bf16.msra.mxu0 %v419_v7  ;;  %v41_v24 = vld [vmem:[#allocation2] sm:$0xff] }
   0x9   :  { %433 = vmatprep.subr.bf16.mxu0 %v446_v0  ;;  %v350_v43 = vld [vmem:[%s583_s6] ss:$0 sm:$0xff]  ;;  %v353_v51 = vld [vmem:[#allocation3] ss:$0 sm:$0xff] }
   0xa   :  { %426 = vmatpush3.bf16.msra.mxu1 %v425_v14  ;;  %v352_v48 = vld [vmem:[%s584_s7] ss:$0 sm:$0xff] }
   0xb   :  { %383 = vmatmul.mubr.msk.f32.vlgmr.msra.gmra.mrb[0].mxu0 %vm46_vm2, %v40_v8  ;;  %427 = vmatprep.subr.bf16.mxu1 %v446_v0 }
   0xc   :  { %412 = vmatprep.mubr.msk.f32.mxu0 %vm447_vm0, %v448_v4  ;;  %435 = vmatpush3.bf16.msra.mxu0 %v434_v23 }
   0xd   :  { %436 = vmatprep.subr.bf16.mxu0 %v446_v0 }
   0xe   :  { %429 = vmatpush3.bf16.msra.mxu1 %v428_v17 }
   0xf   :  { %430 = vmatprep.subr.bf16.mxu1 %v446_v0 }
  0x10   :  { %438 = vmatpush3.bf16.msra.mxu0 %v437_v35 }
  0x12   :  { %432 = vmatpush3.bf16.msra.mxu1 %v431_v20 }
  0xde   :  { %v116_v25 = vpop.f32.mrb[0].mxu0 }
  0xdf   :  { %v120_v26 = vadd.f32 %v116_v25, %v41_v24  ;;  %v384_v27 = vpop.f32.mrb[1].mxu0 }
  0xe1   :  { %122 = vst.msk [vmem:[#allocation2] sm:$0xff] %vm38_vm1, %v120_v26 }
  0xe8   :  { %v126_v29 = vld [vmem:[#allocation2] sm:$0xff] }
  0xe9   :  { %v134_v30 = vadd.f32 %v347_v28, %v126_v29 }
  0xeb   :  { %vm135_vm3 = vcmp.gt.f32.partialorder %v134_v30, 0.0  ;;  %v136_v31 = vmul.f32 0.01, %v134_v30 }
  0xed   :  { %v137_v32 = vsel %vm135_vm3, %v134_v30, %v136_v31 }
  0xee   :  { %402 = vmatmul.mubr.msk.f32.vlgmr.msra.gmra.mrb[0].mxu1 %vm38_vm1, %v137_v32 }
 0x1c1   :  { %v222_v37 = vpop.f32.mrb[0].mxu1 }
 0x1c2   :  { %v223_v38 = vadd.f32 %v348_v36, %v222_v37  ;;  %v403_v39 = vpop.f32.mrb[1].mxu1 }
 0x1c4   :  { %vm226_vm4 = vcmp.gt.f32.partialorder %v223_v38, 0.0  ;;  %v227_v40 = vmul.f32 0.01, %v223_v38 }
 0x1c6   :  { %v228_v41 = vsel %vm226_vm4, %v223_v38, %v227_v40 }
 0x1c7   :  { %413 = vmatmul.mubr.msk.f32.vlgmr.msra.gmra.mrb[2].mxu0 %vm46_vm2, %v228_v41 }
 0x29a   :  { %v309_v44 = vpop.f32.mrb[2].mxu0 }
 0x29b   :  { %v310_v45 = vadd.f32 %v350_v43, %v309_v44  ;;  %v414_v46 = vpop.f32.mrb[3].mxu0 }
 0x29d   :  { %v314_v47 = vmul.f32 0.01, %v310_v45  ;;  %vm313_vm5 = vcmp.gt.f32.partialorder %v310_v45, 0.0 }
 0x29f   :  { %v315_v49 = vsel %vm313_vm5, %v310_v45, %v314_v47 }
 0x2a0   :  { %v323_v50 = vmul.f32 %v352_v48, %v315_v49 }
 0x2a2   :  { %324 = vadd.xlane.f32.xlu0 %v323_v50 }
 0x32f   :  { %v325_v52 = vpop.xlane.xlu0 %324 }
 0x330   :  { %v333_v53 = vadd.f32 %v353_v51, %v325_v52 }
 0x332   :  { %v354_v54 = vmul.f32 -1.442695, %v333_v53 }
 0x334   :  { %442 = vpow2.f32 %v354_v54 }
 0x33e   :  { %v443_v55 = vpop.eup %442 }
 0x33f   :  { %v337_v56 = vadd.f32 1.0, %v443_v55 }
 0x341   :  { %444 = vrcp.f32 %v337_v56 }
 0x34b   :  { %v445_v57 = vpop.eup %444 }
 0x34c   :  { %341 = vst.msk [vmem:[%s585_s9] sm:$0xff] %vm340_vm6, %v445_v57 }

</bundles_post_ra>
